<compile_context>
chip_gen: v7x
topology: tpu7x:2x2x1
jax: 0.10.0
libtpu: 0.0.40
codegen_flags: <defaults>
</compile_context>

<pallas_src>
import math

import jax
import jax.numpy as jnp
from jax.experimental import pallas as pl
from jax.experimental.pallas import tpu as pltpu


# ---------------------------------------------------------------------------
# Kernel bodies
# ---------------------------------------------------------------------------

def _diffs_kernel_3d(test_ref, train_ref, out_ref):
    # test_ref : (tile_t, 1,      d)
    # train_ref: (1,      tile_n, d)
    # out_ref  : (tile_t, tile_n, d)
    t = test_ref[...].astype(out_ref.dtype)
    r = train_ref[...].astype(out_ref.dtype)
    out_ref[...] = t - r            # broadcast subtract on the VPU


def _diffs_kernel_2d(test_rep_ref, train_ref, out_ref):
    # test_rep_ref: (tile_t, tile_n*d)  test rows replicated tile_n times along lanes
    # train_ref   : (1,      tile_n*d)  lane-dense slab of tile_n train rows
    # out_ref     : (tile_t, tile_n*d)  lane-dense output slab
    t = test_rep_ref[...].astype(out_ref.dtype)
    r = train_ref[...].astype(out_ref.dtype)
    out_ref[...] = t - r


# ---------------------------------------------------------------------------
# Tile / VMEM sizing helpers
# ---------------------------------------------------------------------------

def _round_up(x, m):
    return ((x + m - 1) // m) * m


def _vmem_limit_bytes():
    """Generation-aware VMEM budget (~48 MiB on v7x, ~96 MiB on v5e/v6e)."""
    try:
        cap = int(pltpu.get_tpu_info().vmem_capacity_bytes)
    except Exception:
        cap = 64 * 1024 * 1024          # conservative (v7x-sized) default
    return max(32 * 1024 * 1024, min(cap * 3 // 4, 100 * 1024 * 1024))


def _choose_tiles_3d(n_test, n_train, d, itemsize, budget):
    """Tiles for the (tile_t, tile_n, d) path."""
    d_pad = _round_up(d, 128)                     # VMEM lane padding of the last dim
    row_bytes = d_pad * itemsize
    # Train slab gets at most 1/4 of the block budget (it is double-buffered
    # alongside the output block).
    max_train_rows = max(1, (budget // 4) // row_bytes)
    if max_train_rows >= n_train:
        tile_n = n_train                          # full extent: always legal, no padding
    else:
        tile_n = max(8, (max_train_rows // 8) * 8)
        tile_n = min(tile_n, n_train)
    # "+8" accounts for the sublane-padded (tile_t, 1, d) test block.
    tile_t = max(1, budget // ((tile_n + 8) * row_bytes))
    tile_t = min(tile_t, n_test)
    # v7x megacore: make sure the parallel grid has >= 2 blocks when possible.
    if pl.cdiv(n_test, tile_t) == 1 and pl.cdiv(n_train, tile_n) == 1 and n_test >= 2:
        tile_t = pl.cdiv(n_test, 2)
    return tile_t, tile_n


def _choose_tiles_2d(n_test, n_train, d, itemsize, budget, target_lane_elems=2048):
    """Tiles for the lane-dense (tile_t, tile_n*d) path."""
    r = 128 // math.gcd(d, 128)                   # train rows per 128-aligned lane granule
    granule = r * d
    if r >= n_train or n_train * d <= 4096:
        # Small / awkward train set: full-extent lane block (masked edge stores
        # are fine at this size; avoids the 128/gcd padding blowup).
        tile_n = n_train
    else:
        n_gran = max(1, min(target_lane_elems // granule, n_train // r))
        tile_n = n_gran * r                       # lane = tile_n*d is a multiple of 128
    lane = tile_n * d
    tile_t = max(8, (budget // (lane * itemsize)) // 8 * 8)
    if tile_t >= n_test:
        tile_t = n_test                           # full extent (legal even if < 8)
    # v7x megacore nudge when the grid would be (1, 1).
    if tile_t == n_test and pl.cdiv(n_train, tile_n) == 1 and n_test >= 16:
        half = _round_up(pl.cdiv(n_test, 2), 8)
        if half < n_test:
            tile_t = half
    return tile_t, tile_n


# ---------------------------------------------------------------------------
# Wrapper
# ---------------------------------------------------------------------------

def pairwise_diffs(test_Xs, train_Xs, *, force_pallas=False,
                   min_pallas_bytes=2 * 1024 * 1024):
    """Pallas equivalent of Kernel._diffs.

    Accepts (N_test, *feat) and (N_train, *feat); returns (N_test, N_train, *feat).
    """
    n_test = test_Xs.shape[0]
    n_train = train_Xs.shape[0]
    feat_shape = tuple(test_Xs.shape[1:])
    assert feat_shape == tuple(train_Xs.shape[1:]), "feature shapes must match"
    d = math.prod(feat_shape) if feat_shape else 1

    # Match torch broadcast-subtract semantics: promoted input dtype.
    out_dtype = jnp.promote_types(test_Xs.dtype, train_Xs.dtype)
    itemsize = jnp.dtype(out_dtype).itemsize
    out_elems = n_test * n_train * d
    out_bytes = out_elems * itemsize

    # Small-problem fallback: pallas launch + grid overhead would dominate.
    if not force_pallas and out_bytes < min_pallas_bytes:
        return test_Xs.astype(out_dtype)[:, None] - train_Xs.astype(out_dtype)[None, :]

    vmem_limit = _vmem_limit_bytes()
    cparams = pltpu.CompilerParams(
        dimension_semantics=("parallel", "parallel"),
        vmem_limit_bytes=vmem_limit,
    )
    cost = pl.CostEstimate(
        flops=out_elems,
        transcendentals=0,
        bytes_accessed=out_bytes + (n_test + n_train) * d * itemsize,
    )

    # 3-D path whenever the last dim is 128-aligned, or big enough that the
    # lane padding / strided-DMA overhead is negligible.
    use_3d = (d % 128 == 0) or (d * itemsize >= 4096)

    if use_3d:
        budget = max(2 * 1024 * 1024, min(16 * 1024 * 1024, vmem_limit // 3))
        tile_t, tile_n = _choose_tiles_3d(n_test, n_train, d, itemsize, budget)
        grid = (pl.cdiv(n_test, tile_t), pl.cdiv(n_train, tile_n))
        out = pl.pallas_call(
            _diffs_kernel_3d,
            out_shape=jax.ShapeDtypeStruct((n_test, n_train, d), out_dtype),
            grid_spec=pl.GridSpec(
                grid=grid,
                in_specs=[
                    # Test tile: constant along the inner j axis -> fetched once per i.
                    pl.BlockSpec((tile_t, 1, d), lambda i, j: (i, 0, 0)),
                    pl.BlockSpec((1, tile_n, d), lambda i, j: (0, j, 0)),
                ],
                out_specs=pl.BlockSpec((tile_t, tile_n, d), lambda i, j: (i, j, 0)),
            ),
            compiler_params=cparams,
            cost_estimate=cost,
        )(test_Xs.reshape(n_test, 1, d), train_Xs.reshape(1, n_train, d))
        return out.reshape(n_test, n_train, *feat_shape)

    # Lane-dense 2-D slab path (small / unaligned feature dim).
    budget = max(2 * 1024 * 1024, min(12 * 1024 * 1024, vmem_limit // 5))
    tile_t, tile_n = _choose_tiles_2d(n_test, n_train, d, itemsize, budget)
    lane = tile_n * d
    grid = (pl.cdiv(n_test, tile_t), pl.cdiv(n_train, tile_n))

    test_f = test_Xs.reshape(n_test, d)
    train_flat = train_Xs.reshape(1, n_train * d)        # free contiguous reshape
    # Lane-replicated test rows: only n_test * tile_n * d elements, i.e. a
    # tile_n/n_train fraction of the output traffic.
    test_rep = jnp.tile(test_f, (1, tile_n))

    out2d = pl.pallas_call(
        _diffs_kernel_2d,
        out_shape=jax.ShapeDtypeStruct((n_test, n_train * d), out_dtype),
        grid_spec=pl.GridSpec(
            grid=grid,
            in_specs=[
                # Test tile: independent of j -> not re-fetched across the inner axis.
                pl.BlockSpec((tile_t, lane), lambda i, j: (i, 0)),
                # Train tile: lane-dense slab of tile_n training rows.
                pl.BlockSpec((1, lane), lambda i, j: (0, j)),
            ],
            out_specs=pl.BlockSpec((tile_t, lane), lambda i, j: (i, j)),
        ),
        compiler_params=cparams,
        cost_estimate=cost,
    )(test_rep, train_flat)
    return out2d.reshape(n_test, n_train, *feat_shape)


class PallasKernelBase:
    """JAX/Pallas mirror of the abstract PyTorch `Kernel` base class."""

    def __init__(self, bandwidth=1.0):
        self.bandwidth = bandwidth

    def _diffs(self, test_Xs, train_Xs, *, force_pallas=False):
        """diffs[i, j, ...] = test_Xs[i, ...] - train_Xs[j, ...]"""
        return pairwise_diffs(test_Xs, train_Xs, force_pallas=force_pallas)

    def forward(self, test_Xs, train_Xs):
        # TODO(synk): `forward` is @abc.abstractmethod in the PyTorch module — no
        # concrete computation to translate (a concrete subclass would fuse its
        # D-reduction into the diff kernel so the full diff tensor never hits HBM).
        raise NotImplementedError

    def sample(self, train_Xs):
        # TODO(synk): `sample` is @abc.abstractmethod in the PyTorch module.
        raise NotImplementedError


if __name__ == "__main__":
    key = jax.random.PRNGKey(0)
    ks = jax.random.split(key, 10)
    kern = PallasKernelBase(bandwidth=1.0)

    def ref_diffs(a, b):
        dt = jnp.promote_types(a.dtype, b.dtype)
        return a.astype(dt)[:, None] - b.astype(dt)[None, :]

    # Case 1: 128-aligned feature dim -> 3-D fast path, ragged test axis.
    tA = jax.random.normal(ks[0], (27, 128), dtype=jnp.float32)
    rA = jax.random.normal(ks[1], (20, 128), dtype=jnp.float32)
    dA = jax.block_until_ready(pairwise_diffs(tA, rA, force_pallas=True))
    assert dA.shape == (27, 20, 128) and dA.dtype == jnp.float32
    assert jnp.allclose(dA, ref_diffs(tA, rA), atol=1e-6), "mismatch (case 1)"

    # Case 2: small unaligned multi-dim features -> 2-D path, full-extent train tile.
    tB = jax.random.normal(ks[2], (10, 3, 5), dtype=jnp.float32)
    rB = jax.random.normal(ks[3], (12, 3, 5), dtype=jnp.float32)
    dB = jax.block_until_ready(pairwise_diffs(tB, rB, force_pallas=True))
    assert dB.shape == (10, 12, 3, 5)
    assert jnp.allclose(dB, tB[:, None] - rB[None, :], atol=1e-6), "mismatch (case 2)"

    # Case 3: unaligned d=64, larger train set -> 2-D path with 128-aligned lane
    # granules and a ragged final train block.
    tC = jax.random.normal(ks[4], (24, 64), dtype=jnp.float32)
    rC = jax.random.normal(ks[5], (80, 64), dtype=jnp.float32)
    dC = jax.block_until_ready(pairwise_diffs(tC, rC, force_pallas=True))
    assert dC.shape == (24, 80, 64)
    assert jnp.allclose(dC, ref_diffs(tC, rC), atol=1e-6), "mismatch (case 3)"

    # Case 4: mixed dtypes (bf16 test, f32 train) -> in-kernel promotion, 3-D path.
    tD = jax.random.normal(ks[6], (9, 128), dtype=jnp.bfloat16)
    rD = jax.random.normal(ks[7], (11, 128), dtype=jnp.float32)
    dD = jax.block_until_ready(pairwise_diffs(tD, rD, force_pallas=True))
    assert dD.shape == (9, 11, 128) and dD.dtype == jnp.float32
    assert jnp.allclose(dD, ref_diffs(tD, rD), atol=1e-6), "mismatch (case 4)"

    # Case 5: tiny problem through the class API -> small-problem XLA fallback.
    tE = jax.random.normal(ks[8], (6, 4, 2), dtype=jnp.float32)
    rE = jax.random.normal(ks[9], (5, 4, 2), dtype=jnp.float32)
    dE = jax.block_until_ready(kern._diffs(tE, rE))
    assert dE.shape == (6, 5, 4, 2)
    assert jnp.allclose(dE, tE[:, None] - rE[None, :], atol=1e-6), "mismatch (case 5)"

    print("KERNEL_OK")
</pallas_src>

<mosaic_0001>
module attributes {stable_mosaic.version = 11 : i64} {
  func.func @_diffs_kernel_3d(%arg0: i32, %arg1: i32, %arg2: memref<14x1x128xf32, #tpu.memory_space<vmem>>, %arg3: memref<1x20x128xf32, #tpu.memory_space<vmem>>, %arg4: memref<14x20x128xf32, #tpu.memory_space<vmem>>) attributes {dimension_semantics = [#tpu.dimension_semantics<parallel>, #tpu.dimension_semantics<parallel>], iteration_bounds = array<i64: 2, 1>, scalar_prefetch = 0 : i64, scratch_operands = 0 : i64, tpu.core_type = #tpu.core_type<tc>, window_params = [{transform_indices = @transform_0, window_bounds = array<i64: 14, 1, 128>}, {transform_indices = @transform_1, window_bounds = array<i64: 1, 20, 128>}, {transform_indices = @transform_2, window_bounds = array<i64: 14, 20, 128>}]} {
    %c0 = arith.constant 0 : index
    %c0_0 = arith.constant 0 : index
    %c0_1 = arith.constant 0 : index
    %0 = vector.load %arg2[%c0, %c0_0, %c0_1] : memref<14x1x128xf32, #tpu.memory_space<vmem>>, vector<14x1x128xf32>
    %c0_2 = arith.constant 0 : index
    %c0_3 = arith.constant 0 : index
    %c0_4 = arith.constant 0 : index
    %1 = vector.load %arg3[%c0_2, %c0_3, %c0_4] : memref<1x20x128xf32, #tpu.memory_space<vmem>>, vector<1x20x128xf32>
    %2 = vector.broadcast %0 : vector<14x1x128xf32> to vector<14x20x128xf32>
    %3 = vector.broadcast %1 : vector<1x20x128xf32> to vector<14x20x128xf32>
    %4 = arith.subf %2, %3 : vector<14x20x128xf32>
    %c0_5 = arith.constant 0 : index
    %c0_6 = arith.constant 0 : index
    %c0_7 = arith.constant 0 : index
    %5 = vector.load %arg4[%c0_5, %c0_6, %c0_7] : memref<14x20x128xf32, #tpu.memory_space<vmem>>, vector<14x20x128xf32>
    tpu.vector_store %arg4[%c0_5, %c0_6, %c0_7], %4 {strides = array<i32>} : memref<14x20x128xf32, #tpu.memory_space<vmem>>, vector<14x20x128xf32>,
    return
  }
  func.func @transform_0(%arg0: i32, %arg1: i32) -> (i32, i32, i32) {
    %c0_i32 = arith.constant 0 : i32
    %c0_i32_0 = arith.constant 0 : i32
    %c0_i32_1 = arith.constant 0 : i32
    return %arg0, %c0_i32, %c0_i32_0 : i32, i32, i32
  }
  func.func @transform_1(%arg0: i32, %arg1: i32) -> (i32, i32, i32) {
    %c0_i32 = arith.constant 0 : i32
    %c0_i32_0 = arith.constant 0 : i32
    %c0_i32_1 = arith.constant 0 : i32
    return %c0_i32, %arg1, %c0_i32_0 : i32, i32, i32
  }
  func.func @transform_2(%arg0: i32, %arg1: i32) -> (i32, i32, i32) {
    %c0_i32 = arith.constant 0 : i32
    %c0_i32_0 = arith.constant 0 : i32
    return %arg0, %arg1, %c0_i32 : i32, i32, i32
  }
}

</mosaic_0001>

<bundles_post_ra>
// kernel: tpu_custom_call.1
= control target key start
LH: loop header
LB: loop body
LE: loop exit
PB: predicated region body
PF: predicated region fallthrough
CT: control target
= control target key end

     0   :  { %s1058_s9 = smov 0   ;;  %s1060_s10 = smov 0   ;;  %s1388_s0 = inlined_call_operand.vmem [shape: f32[27,1,128], index: 0, kind: input, shape index: {}]   ;;  %s1389_s1 = inlined_call_operand.vmem [shape: f32[1,20,128], index: 1, kind: input, shape index: {}]   ;;  %s1390_s2 = inlined_call_operand.vmem [shape: f32[27,20,128], index: 2, kind: output, shape index: {}]  }
   0x1   :  { %s1062_s11 = smov 0   ;;  %s1064_s12 = smov 0  }
   0x2   :  { %s1066_s13 = smov 0  }
   0x3 LB: > { %s794_s14 = sadd.s32 4294967295, %s1009_s13   ;;  %s24_s15 = sadd.s32 1, %s1005_s12  ;;  %s1009_s13 = sphi %s1066_s13, %s12_s13   ;;  %s1005_s12 = sphi %s1064_s12, %s1400_s12   ;;  %s1001_s11 = sphi %s1062_s11, %s1399_s11   ;;  %s997_s10 = sphi %s1060_s10, %s1398_s10   ;;  %s993_s9 = sphi %s1058_s9, %s1397_s9  }
   0x4   : > { %p26_p0 = scmp.ge.s32.totalorder %s24_s15, 2  ;;  %s85_s16 = sadd.s32 1, %s997_s10 }
   0x5   : > { %p95_p1 = scmp.ne.s32.totalorder %s997_s10, %s993_s9  ;;  %p96_p2 = scmp.eq.s32.totalorder %s794_s14, 1 }
   0x6   : > { %s1402_s15 = smov (%p26_p0, %s24_s15), 0  ;;  %p799_p4 = scmp.ge.s32.totalorder %s1009_s13, 1 }
   0x7   : > { %p1087_p3 = por %p96_p2, %p95_p1  ;;  %s80_s18 = ssub.s32 %s1005_s12, %s1402_s15 }
   0x8   : > { %p145_p5 = scmp.lt.s32.totalorder %s1009_s13, 3  ;;  %p83_p6 = scmp.eq.s32.totalorder %s80_s18, 0 }
   0xa   : > { %p146_p7 = pnand %p799_p4, %p145_p5 }
   0xb   : > { %s1096_s19 = scalar_select %p83_p6, %s997_s10, %s85_s16  }
   0xc   : > { %149 = sbr.rel (%p146_p7) target bundleno = 120 (0x78), region = 28  ;;  %s171_s20 = sand.u32 (!%p146_p7), 1, %s993_s9   ;;  %v1106_v0 = vld [vmem:[%s1389_s1] sm:$0xff] (!%p146_p7)  ;;  %v1111_v1 = vld [vmem:[%s1389_s1 + $0x8] sm:$0xff] (!%p146_p7)  ;;  %v1116_v2 = vld [vmem:[%s1389_s1 + $0x10] sm:$0xf] (!%p146_p7) }
   0xd   : > { %s1099_s21 = smul.u32 (!%p146_p7), 14, %s1001_s11 }
   0xe   : > { %s827_s22 = smul.u32 (!%p146_p7), 336, %s171_s20 }
   0xf   : > { %p179_p8 = scmp.lt.s32.totalorder (!%p146_p7), %s1099_s21, 26 }
  0x10   : > { %s1138_s5 = scalar_lea.vmem (!%p146_p7), [#allocation2], %s827_s22  }
  0x13   : > { %s180_s23 = scalar_select %p179_p8, %s1099_s21, 26 }
  0x14   : > { %s394_s6 = ssub.s32 (%p1087_p3), 27, %s1099_s21  ;;  %s829_s7 = smul.u32 (%p1087_p3), 336, %s1001_s11 }
  0x15   : > { %s1121_s4 = scalar_lea.vmem %s1388_s0, %s180_s23  ;;  %p395_p9 = scmp.lt.s32.totalorder (%p1087_p3), %s394_s6, 14 }
  0x16   : > { %v800_v3 = vld [vmem:[%s1121_s4] ss:$0 sm:$0xff]  ;;  %v801_v4 = vld [vmem:[%s1121_s4 + $0x1] ss:$0 sm:$0xff]  ;;  %v802_v5 = vld [vmem:[%s1121_s4 + $0x2] ss:$0 sm:$0xff]  ;;  %s1230_s14 = scalar_lea.vmem (%p1087_p3), %s1390_s2, %s829_s7  }
  0x17   : > { %v301_v6 = vsub.f32 %v800_v3, %v1106_v0  ;;  %v302_v7 = vsub.f32 %v800_v3, %v1111_v1  ;;  %v303_v8 = vsub.f32 %v800_v3, %v1116_v2  ;;  %v304_v9 = vsub.f32 %v801_v4, %v1106_v0  ;;  %v803_v10 = vld [vmem:[%s1121_s4 + $0x3] ss:$0 sm:$0xff]  ;;  %v804_v11 = vld [vmem:[%s1121_s4 + $0x4] ss:$0 sm:$0xff]  ;;  %v805_v12 = vld [vmem:[%s1121_s4 + $0x5] ss:$0 sm:$0xff] }
  0x18   : > { %v305_v13 = vsub.f32 %v801_v4, %v1111_v1  ;;  %v306_v14 = vsub.f32 %v801_v4, %v1116_v2  ;;  %v307_v15 = vsub.f32 %v802_v5, %v1106_v0  ;;  %v308_v16 = vsub.f32 %v802_v5, %v1111_v1  ;;  %v806_v17 = vld [vmem:[%s1121_s4 + $0x6] ss:$0 sm:$0xff]  ;;  %v807_v22 = vld [vmem:[%s1121_s4 + $0x7] ss:$0 sm:$0xff]  ;;  %v808_v27 = vld [vmem:[%s1121_s4 + $0x8] ss:$0 sm:$0xff] }
  0x19   : > { %343 = vst [vmem:[%s1138_s5] sm:$0xff] %v301_v6  ;;  %344 = vst [vmem:[%s1138_s5 + $0x8] sm:$0xff] %v302_v7  ;;  %v309_v18 = vsub.f32 %v802_v5, %v1116_v2  ;;  %v310_v19 = vsub.f32 %v803_v10, %v1106_v0  ;;  %v311_v20 = vsub.f32 %v803_v10, %v1111_v1  ;;  %v809_v28 = vld [vmem:[%s1121_s4 + $0x9] ss:$0 sm:$0xff]  ;;  %v810_v33 = vld [vmem:[%s1121_s4 + $0xa] ss:$0 sm:$0xff] }
  0x1a   : > { %345 = vst [vmem:[%s1138_s5 + $0x10] sm:$0xf] %v303_v8  ;;  %346 = vst [vmem:[%s1138_s5 + $0x18] sm:$0xff] %v304_v9  ;;  %v312_v21 = vsub.f32 %v803_v10, %v1116_v2  ;;  %v313_v23 = vsub.f32 %v804_v11, %v1106_v0  ;;  %v314_v24 = vsub.f32 %v804_v11, %v1111_v1  ;;  %v811_v38 = vld [vmem:[%s1121_s4 + $0xb] ss:$0 sm:$0xff] }
  0x1b   : > { %347 = vst [vmem:[%s1138_s5 + $0x20] sm:$0xff] %v305_v13  ;;  %348 = vst [vmem:[%s1138_s5 + $0x28] sm:$0xf] %v306_v14  ;;  %v315_v25 = vsub.f32 %v804_v11, %v1116_v2  ;;  %v316_v26 = vsub.f32 %v805_v12, %v1106_v0  ;;  %v317_v29 = vsub.f32 %v805_v12, %v1111_v1  ;;  %v812_v43 = vld [vmem:[%s1121_s4 + $0xc] ss:$0 sm:$0xff] }
  0x1c   : > { %349 = vst [vmem:[%s1138_s5 + $0x30] sm:$0xff] %v307_v15  ;;  %350 = vst [vmem:[%s1138_s5 + $0x38] sm:$0xff] %v308_v16  ;;  %v318_v30 = vsub.f32 %v805_v12, %v1116_v2  ;;  %v319_v31 = vsub.f32 %v806_v17, %v1106_v0  ;;  %v320_v32 = vsub.f32 %v806_v17, %v1111_v1  ;;  %v813_v44 = vld [vmem:[%s1121_s4 + $0xd] ss:$0 sm:$0xff] }
  0x1d   : > { %351 = vst [vmem:[%s1138_s5 + $0x40] sm:$0xf] %v309_v18  ;;  %352 = vst [vmem:[%s1138_s5 + $0x48] sm:$0xff] %v310_v19  ;;  %v321_v34 = vsub.f32 %v806_v17, %v1116_v2  ;;  %v322_v35 = vsub.f32 %v807_v22, %v1106_v0  ;;  %v323_v36 = vsub.f32 %v807_v22, %v1111_v1 }
  0x1e   : > { %353 = vst [vmem:[%s1138_s5 + $0x50] sm:$0xff] %v311_v20  ;;  %354 = vst [vmem:[%s1138_s5 + $0x58] sm:$0xf] %v312_v21  ;;  %v324_v37 = vsub.f32 %v807_v22, %v1116_v2  ;;  %v325_v39 = vsub.f32 %v808_v27, %v1106_v0  ;;  %v326_v40 = vsub.f32 %v808_v27, %v1111_v1 }
  0x1f   : > { %355 = vst [vmem:[%s1138_s5 + $0x60] sm:$0xff] %v313_v23  ;;  %356 = vst [vmem:[%s1138_s5 + $0x68] sm:$0xff] %v314_v24  ;;  %v327_v41 = vsub.f32 %v808_v27, %v1116_v2  ;;  %v328_v42 = vsub.f32 %v809_v28, %v1106_v0  ;;  %v329_v45 = vsub.f32 %v809_v28, %v1111_v1 }
  0x20   : > { %357 = vst [vmem:[%s1138_s5 + $0x70] sm:$0xf] %v315_v25  ;;  %358 = vst [vmem:[%s1138_s5 + $0x78] sm:$0xff] %v316_v26  ;;  %v330_v46 = vsub.f32 %v809_v28, %v1116_v2  ;;  %v331_v47 = vsub.f32 %v810_v33, %v1106_v0  ;;  %v332_v48 = vsub.f32 %v810_v33, %v1111_v1 }
  0x21   : > { %359 = vst [vmem:[%s1138_s5 + $0x80] sm:$0xff] %v317_v29  ;;  %360 = vst [vmem:[%s1138_s5 + $0x88] sm:$0xf] %v318_v30  ;;  %v333_v49 = vsub.f32 %v810_v33, %v1116_v2  ;;  %v334_v50 = vsub.f32 %v811_v38, %v1106_v0  ;;  %v335_v51 = vsub.f32 %v811_v38, %v1111_v1 }
  0x22   : > { %361 = vst [vmem:[%s1138_s5 + $0x90] sm:$0xff] %v319_v31  ;;  %362 = vst [vmem:[%s1138_s5 + $0x98] sm:$0xff] %v320_v32  ;;  %v336_v52 = vsub.f32 %v811_v38, %v1116_v2  ;;  %v337_v53 = vsub.f32 %v812_v43, %v1106_v0  ;;  %v338_v54 = vsub.f32 %v812_v43, %v1111_v1 }
  0x23   : > { %363 = vst [vmem:[%s1138_s5 + $0xa0] sm:$0xf] %v321_v34  ;;  %364 = vst [vmem:[%s1138_s5 + $0xa8] sm:$0xff] %v322_v35  ;;  %v339_v55 = vsub.f32 %v812_v43, %v1116_v2  ;;  %v340_v56 = vsub.f32 %v813_v44, %v1106_v0  ;;  %v341_v57 = vsub.f32 %v813_v44, %v1111_v1 }
  0x24   : > { %365 = vst [vmem:[%s1138_s5 + $0xb0] sm:$0xff] %v323_v36  ;;  %366 = vst [vmem:[%s1138_s5 + $0xb8] sm:$0xf] %v324_v37  ;;  %v342_v58 = vsub.f32 %v813_v44, %v1116_v2 }
  0x25   : > { %367 = vst [vmem:[%s1138_s5 + $0xc0] sm:$0xff] %v325_v39  ;;  %368 = vst [vmem:[%s1138_s5 + $0xc8] sm:$0xff] %v326_v40 }
  0x26   : > { %369 = vst [vmem:[%s1138_s5 + $0xd0] sm:$0xf] %v327_v41  ;;  %370 = vst [vmem:[%s1138_s5 + $0xd8] sm:$0xff] %v328_v42 }
  0x27   : > { %371 = vst [vmem:[%s1138_s5 + $0xe0] sm:$0xff] %v329_v45  ;;  %372 = vst [vmem:[%s1138_s5 + $0xe8] sm:$0xf] %v330_v46  ;;  %391 = sbr.rel (!%p1087_p3) target bundleno = 120 (0x78), region = 32 }
  0x28   : > { %373 = vst [vmem:[%s1138_s5 + $0xf0] sm:$0xff] %v331_v47  ;;  %374 = vst [vmem:[%s1138_s5 + $0xf8] sm:$0xff] %v332_v48 }
  0x29   : > { %375 = vst [vmem:[%s1138_s5 + $0x100] sm:$0xf] %v333_v49  ;;  %376 = vst [vmem:[%s1138_s5 + $0x108] sm:$0xff] %v334_v50 }
  0x2a   : > { %377 = vst [vmem:[%s1138_s5 + $0x110] sm:$0xff] %v335_v51  ;;  %378 = vst [vmem:[%s1138_s5 + $0x118] sm:$0xf] %v336_v52 }
  0x2b   : > { %379 = vst [vmem:[%s1138_s5 + $0x120] sm:$0xff] %v337_v53  ;;  %380 = vst [vmem:[%s1138_s5 + $0x128] sm:$0xff] %v338_v54 }
  0x2c   : > { %381 = vst [vmem:[%s1138_s5 + $0x130] sm:$0xf] %v339_v55  ;;  %382 = vst [vmem:[%s1138_s5 + $0x138] sm:$0xff] %v340_v56 }
  0x2d   : > { %383 = vst [vmem:[%s1138_s5 + $0x140] sm:$0xff] %v341_v57  ;;  %384 = vst [vmem:[%s1138_s5 + $0x148] sm:$0xf] %v342_v58 }
  0x2e   : > { %s1404_s6 = smov (!%p395_p9, %s394_s6), 14 }
  0x2f   : > { %s815_s16 = smul.u32 384, %s1404_s6 }
  0x30   : > { %s404_s18 = smul.u32 3, %s1404_s6 }
  0x31   : > { %p818_p10 = scmp.eq.s32.totalorder %s815_s16, 0 }
  0x32   : > { %935 = sdivrem.u32 (!%p818_p10), %s404_s18, 42 }
  0x33   : > { %407 = sbr.rel (%p818_p10) target bundleno = 120 (0x78), region = 36 }
  0x3b   : > { %s1238_s17 = spop.drf %935 }
  0x3c   : > { %p819_p11 = scmp.le.s32.totalorder %s1238_s17, 0 }
  0x3d   : > { %s1392_s11 = smov (!%p819_p11), %s1230_s14  ;;  %s1393_s20 = smov (!%p819_p11), %s1138_s5 }
  0x3e   : > { %733 = sbr.rel (%p819_p11) target bundleno = 91 (0x5b), region = 115  ;;  %s1247_s21 = smov (!%p819_p11), 0  }
  0x3f   : > { %s1249_s22 = smov (!%p819_p11), 0  }
  0x45 LB: >> { %v553_v59 = vld [vmem:[%s1017_s20] sm:$0xff]  ;;  %v555_v60 = vld [vmem:[%s1017_s20 + $0x8] sm:$0xff]  ;;  %v557_v61 = vld [vmem:[%s1017_s20 + $0x10] sm:$0xff]  ;;  %s637_s23 = sadd.s32 1, %s1021_s21  ;;  %s547_s22 = sadd.s32 1, %s1025_s22   ;;  %s1025_s22 = sphi %s1249_s22, %s547_s22   ;;  %s1021_s21 = sphi %s1247_s21, %s1396_s21   ;;  %s1017_s20 = sphi %s1393_s20, %s1395_s20   ;;  %s1013_s11 = sphi %s1392_s11, %s1394_s11  }
  0x46   : >> { %554 = vst [vmem:[%s1013_s11] sm:$0xff] %v553_v59  ;;  %556 = vst [vmem:[%s1013_s11 + $0x8] sm:$0xff] %v555_v60  ;;  %v559_v62 = vld [vmem:[%s1017_s20 + $0x18] sm:$0xff]  ;;  %v561_v63 = vld [vmem:[%s1017_s20 + $0x20] sm:$0xff]  ;;  %p638_p12 = scmp.ge.s32.totalorder %s637_s23, %s1238_s17  ;;  %p546_p13 = scmp.ge.s32.totalorder %s547_s22, %s1238_s17 }
  0x47   : >> { %558 = vst [vmem:[%s1013_s11 + $0x10] sm:$0xff] %v557_v61  ;;  %v563_v0 = vld [vmem:[%s1017_s20 + $0x28] sm:$0xff]  ;;  %560 = vst [vmem:[%s1013_s11 + $0x18] sm:$0xff] %v559_v62  ;;  %v565_v1 = vld [vmem:[%s1017_s20 + $0x30] sm:$0xff] }
  0x48   : >> { %562 = vst [vmem:[%s1013_s11 + $0x20] sm:$0xff] %v561_v63  ;;  %564 = vst [vmem:[%s1013_s11 + $0x28] sm:$0xff] %v563_v0  ;;  %v567_v2 = vld [vmem:[%s1017_s20 + $0x38] sm:$0xff]  ;;  %v569_v3 = vld [vmem:[%s1017_s20 + $0x40] sm:$0xff]  ;;  %s1406_s23 = smov (%p638_p12, %s637_s23), 0 }
  0x49   : >> { %566 = vst [vmem:[%s1013_s11 + $0x30] sm:$0xff] %v565_v1  ;;  %568 = vst [vmem:[%s1013_s11 + $0x38] sm:$0xff] %v567_v2  ;;  %v571_v4 = vld [vmem:[%s1017_s20 + $0x48] sm:$0xff]  ;;  %v573_v5 = vld [vmem:[%s1017_s20 + $0x50] sm:$0xff]  ;;  %s640_s24 = smul.u32 336, %s1406_s23  ;;  %s1396_s21 = smov %s1406_s23 }
  0x4a   : >> { %570 = vst [vmem:[%s1013_s11 + $0x40] sm:$0xff] %v569_v3  ;;  %v575_v6 = vld [vmem:[%s1017_s20 + $0x58] sm:$0xff]  ;;  %572 = vst [vmem:[%s1013_s11 + $0x48] sm:$0xff] %v571_v4  ;;  %v577_v7 = vld [vmem:[%s1017_s20 + $0x60] sm:$0xff] }
  0x4b   : >> { %574 = vst [vmem:[%s1013_s11 + $0x50] sm:$0xff] %v573_v5  ;;  %576 = vst [vmem:[%s1013_s11 + $0x58] sm:$0xff] %v575_v6  ;;  %v579_v8 = vld [vmem:[%s1017_s20 + $0x68] sm:$0xff]  ;;  %v581_v9 = vld [vmem:[%s1017_s20 + $0x70] sm:$0xff]  ;;  %s1311_s25 = scalar_lea.vmem %s1138_s5, %s640_s24 [#allocation2]   ;;  %s1314_s26 = scalar_lea.vmem %s1230_s14, %s640_s24  }
  0x4c   : >> { %578 = vst [vmem:[%s1013_s11 + $0x60] sm:$0xff] %v577_v7  ;;  %580 = vst [vmem:[%s1013_s11 + $0x68] sm:$0xff] %v579_v8  ;;  %v583_v10 = vld [vmem:[%s1017_s20 + $0x78] sm:$0xff]  ;;  %v585_v11 = vld [vmem:[%s1017_s20 + $0x80] sm:$0xff] }
  0x4d   : >> { %582 = vst [vmem:[%s1013_s11 + $0x70] sm:$0xff] %v581_v9  ;;  %v587_v12 = vld [vmem:[%s1017_s20 + $0x88] sm:$0xff]  ;;  %584 = vst [vmem:[%s1013_s11 + $0x78] sm:$0xff] %v583_v10  ;;  %v589_v13 = vld [vmem:[%s1017_s20 + $0x90] sm:$0xff] }
  0x4e   : >> { %586 = vst [vmem:[%s1013_s11 + $0x80] sm:$0xff] %v585_v11  ;;  %588 = vst [vmem:[%s1013_s11 + $0x88] sm:$0xff] %v587_v12  ;;  %v591_v14 = vld [vmem:[%s1017_s20 + $0x98] sm:$0xff]  ;;  %v593_v15 = vld [vmem:[%s1017_s20 + $0xa0] sm:$0xff] }
  0x4f   : >> { %590 = vst [vmem:[%s1013_s11 + $0x90] sm:$0xff] %v589_v13  ;;  %592 = vst [vmem:[%s1013_s11 + $0x98] sm:$0xff] %v591_v14  ;;  %v595_v16 = vld [vmem:[%s1017_s20 + $0xa8] sm:$0xff]  ;;  %v597_v17 = vld [vmem:[%s1017_s20 + $0xb0] sm:$0xff] }
  0x50   : >> { %594 = vst [vmem:[%s1013_s11 + $0xa0] sm:$0xff] %v593_v15  ;;  %v599_v18 = vld [vmem:[%s1017_s20 + $0xb8] sm:$0xff]  ;;  %596 = vst [vmem:[%s1013_s11 + $0xa8] sm:$0xff] %v595_v16  ;;  %v601_v19 = vld [vmem:[%s1017_s20 + $0xc0] sm:$0xff] }
  0x51   : >> { %598 = vst [vmem:[%s1013_s11 + $0xb0] sm:$0xff] %v597_v17  ;;  %600 = vst [vmem:[%s1013_s11 + $0xb8] sm:$0xff] %v599_v18  ;;  %v603_v20 = vld [vmem:[%s1017_s20 + $0xc8] sm:$0xff]  ;;  %v605_v21 = vld [vmem:[%s1017_s20 + $0xd0] sm:$0xff] }
  0x52   : >> { %602 = vst [vmem:[%s1013_s11 + $0xc0] sm:$0xff] %v601_v19  ;;  %604 = vst [vmem:[%s1013_s11 + $0xc8] sm:$0xff] %v603_v20  ;;  %v607_v22 = vld [vmem:[%s1017_s20 + $0xd8] sm:$0xff]  ;;  %v609_v23 = vld [vmem:[%s1017_s20 + $0xe0] sm:$0xff] }
  0x53   : >> { %606 = vst [vmem:[%s1013_s11 + $0xd0] sm:$0xff] %v605_v21  ;;  %v611_v24 = vld [vmem:[%s1017_s20 + $0xe8] sm:$0xff]  ;;  %608 = vst [vmem:[%s1013_s11 + $0xd8] sm:$0xff] %v607_v22  ;;  %v613_v25 = vld [vmem:[%s1017_s20 + $0xf0] sm:$0xff] }
  0x54   : >> { %610 = vst [vmem:[%s1013_s11 + $0xe0] sm:$0xff] %v609_v23  ;;  %612 = vst [vmem:[%s1013_s11 + $0xe8] sm:$0xff] %v611_v24  ;;  %v615_v26 = vld [vmem:[%s1017_s20 + $0xf8] sm:$0xff]  ;;  %v617_v27 = vld [vmem:[%s1017_s20 + $0x100] sm:$0xff]  ;;  %549 = sbr.rel (!%p546_p13) target bundleno = 69 (0x45), region = 121 }
  0x55   : >> { %614 = vst [vmem:[%s1013_s11 + $0xf0] sm:$0xff] %v613_v25  ;;  %616 = vst [vmem:[%s1013_s11 + $0xf8] sm:$0xff] %v615_v26  ;;  %v619_v28 = vld [vmem:[%s1017_s20 + $0x108] sm:$0xff]  ;;  %v621_v29 = vld [vmem:[%s1017_s20 + $0x110] sm:$0xff] }
  0x56   : >> { %618 = vst [vmem:[%s1013_s11 + $0x100] sm:$0xff] %v617_v27  ;;  %v623_v30 = vld [vmem:[%s1017_s20 + $0x118] sm:$0xff]  ;;  %620 = vst [vmem:[%s1013_s11 + $0x108] sm:$0xff] %v619_v28  ;;  %v625_v31 = vld [vmem:[%s1017_s20 + $0x120] sm:$0xff] }
  0x57   : >> { %622 = vst [vmem:[%s1013_s11 + $0x110] sm:$0xff] %v621_v29  ;;  %624 = vst [vmem:[%s1013_s11 + $0x118] sm:$0xff] %v623_v30  ;;  %v627_v32 = vld [vmem:[%s1017_s20 + $0x128] sm:$0xff]  ;;  %v629_v33 = vld [vmem:[%s1017_s20 + $0x130] sm:$0xff] }
  0x58   : >> { %626 = vst [vmem:[%s1013_s11 + $0x120] sm:$0xff] %v625_v31  ;;  %628 = vst [vmem:[%s1013_s11 + $0x128] sm:$0xff] %v627_v32  ;;  %v631_v34 = vld [vmem:[%s1017_s20 + $0x138] sm:$0xff]  ;;  %v633_v35 = vld [vmem:[%s1017_s20 + $0x140] sm:$0xff] }
  0x59   : >> { %630 = vst [vmem:[%s1013_s11 + $0x130] sm:$0xff] %v629_v33  ;;  %v635_v36 = vld [vmem:[%s1017_s20 + $0x148] sm:$0xff]  ;;  %632 = vst [vmem:[%s1013_s11 + $0x138] sm:$0xff] %v631_v34  ;;  %s1395_s20 = smov %s1311_s25 }
  0x5a   : >> { %634 = vst [vmem:[%s1013_s11 + $0x140] sm:$0xff] %v633_v35  ;;  %636 = vst [vmem:[%s1013_s11 + $0x148] sm:$0xff] %v635_v36  ;;  %s1394_s11 = smov %s1314_s26 }
  0x5b PF: > { %937 = sdivrem.u32 %s404_s18, 42 }
  0x5c   : > { %s820_s27 = smul.u32 336, %s1238_s17 }
  0x5e   : > { %s648_s28 = scalar_lea.vmem %s1138_s5, %s820_s27 [#allocation2]   ;;  %s650_s29 = scalar_lea.vmem %s1230_s14, %s820_s27  }
  0x64   : > { %s938_s30 = spop.drf %937 }
  0x65   : > { %p822_p0 = scmp.le.s32.totalorder %s938_s30, 0 }
  0x66   : > { %s1027_s3 = smov (!%p822_p0), %s650_s29   ;;  %s1031_s4 = smov (!%p822_p0), %s648_s28  }
  0x67   : > { %747 = sbr.rel (%p822_p0) target bundleno = 120 (0x78), region = 126  ;;  %s1035_s7 = smov (!%p822_p0), 0  }
  0x68   : > { %s1039_s8 = smov (!%p822_p0), 0  }
  0x6e LB: >> { %v660_v37 = vld [vmem:[%s1033_s4] sm:$0xff]  ;;  %s662_s6 = sadd.s32 1, %s1037_s7  ;;  %s654_s8 = sadd.s32 1, %s1041_s8   ;;  %s1041_s8 = sphi %s1039_s8, %s654_s8   ;;  %s1037_s7 = sphi %s1035_s7, %s1036_s7   ;;  %s1033_s4 = sphi %s1031_s4, %s667_s4   ;;  %s1029_s3 = sphi %s1027_s3, %s668_s3  }
  0x6f   : >> { %661 = vst [vmem:[%s1029_s3] sm:$0xff] %v660_v37  ;;  %p663_p1 = scmp.ge.s32.totalorder %s662_s6, %s938_s30  ;;  %p653_p2 = scmp.ge.s32.totalorder %s654_s8, %s938_s30 }
  0x71   : >> { %s1408_s6 = smov (%p663_p1, %s662_s6), 0  ;;  %656 = sbr.rel (!%p653_p2) target bundleno = 110 (0x6e), region = 132 }
  0x72   : >> { %s823_s5 = sshll.u32 %s1408_s6, 3  ;;  %s1036_s7 = smov %s1408_s6  }
  0x73   : >> { %s667_s4 = scalar_lea.vmem %s648_s28, %s823_s5 [#allocation2]   ;;  %s668_s3 = scalar_lea.vmem %s650_s29, %s823_s5  }
  0x78 PF: > { %s12_s13 = sadd.s32 1, %s1009_s13   ;;  %s1397_s9 = smov %s997_s10 }
  0x79   : > { %p9_p3 = scmp.ge.s32.totalorder %s12_s13, 4   ;;  %s1398_s10 = smov %s1096_s19 }
  0x7a   : > { %s1399_s11 = smov %s1005_s12  ;;  %s1400_s12 = smov %s1402_s15 }
  0x7b   :  { %11 = sbr.rel (!%p9_p3) target bundleno = 3 (0x3), region = 143 }

</bundles_post_ra>
